<compile_context>
chip_gen: v7x
topology: tpu7x:2x2x1
jax: 0.10.0
libtpu: 0.0.40
codegen_flags: <defaults>
</compile_context>

<pallas_src>
import jax
import jax.numpy as jnp
from jax.experimental import pallas as pl
from jax.experimental.pallas import tpu as pltpu

EPS = 1e-5  # nn.BatchNorm1d default

_TARGET_BLOCK_BYTES = 4 * 1024 * 1024   # ~2-6 MiB per data block hits HBM roofline
_MIN_GRID_STEPS = 8                      # >= 4 pipelined steps per v7x TensorCore


def _round_up(x, m):
    return (x + m - 1) // m * m


def _vmem_budgets():
    """Generation-aware scoped-VMEM request and data-tile budget (bytes)."""
    try:
        cap = int(pltpu.get_tpu_info().vmem_capacity_bytes)
    except Exception:  # interpret mode / unknown chip: assume v7x-sized VMEM
        cap = 64 * 1024 * 1024
    # ~96 MiB on 128-MiB parts (v5e/v6e), ~48 MiB on v7x (64 MiB per core).
    limit = min(cap * 3 // 4, 96 * 1024 * 1024)
    limit = max(limit, 16 * 1024 * 1024)
    budget = max(limit - 8 * 1024 * 1024, limit // 2)  # headroom for scratch/params
    return limit, budget


def _select_tile_c(C, N, itemsize, tile_budget):
    """Feature-axis tile size for the (tile_c, N) streaming blocks."""
    sub_min = 8 * max(1, 4 // itemsize)          # 8 (f32), 16 (bf16), 32 (int8)
    row_bytes = _round_up(N, 128) * itemsize     # VMEM bytes per feature row (lane-padded)
    # Double-buffered input + output data blocks, plus 2 params x 2 buffers of
    # lane-padded (tile_c, 1) gamma/beta (<= 512 B per row per buffer).
    per_row = 4 * row_bytes + 4 * 512

    if C <= sub_min:
        if per_row * C > tile_budget:
            # TODO(synk): add an N-tiled two-pass (sum/sumsq scratch accumulator)
            # variant instead of failing for huge batch sizes.
            raise ValueError("batch axis too large for a single VMEM block")
        return C  # full-extent feature block (legal even if < 8 rows)

    if per_row * sub_min > tile_budget:
        # TODO(synk): N-tiled two-pass fallback for huge N (see above).
        raise ValueError("batch axis too large for a single VMEM block")

    rows_cap = max(sub_min, tile_budget // per_row // sub_min * sub_min)
    rows_target = max(sub_min, _TARGET_BLOCK_BYTES // row_bytes // sub_min * sub_min)
    tile_c = max(sub_min, min(rows_cap, rows_target))

    # Enough grid steps for megacore sharding + DMA/compute overlap, as long as
    # every step still gets >= sub_min feature rows.
    desired_steps = min(_MIN_GRID_STEPS, C // sub_min)
    if desired_steps >= 2:
        tile_c = min(tile_c, max(sub_min, (C // desired_steps) // sub_min * sub_min))

    # Balance the steps so the final (partial) tile is as full as possible.
    steps = -(-C // tile_c)
    tile_c = _round_up(-(-C // steps), sub_min)
    return tile_c


def _bn_kernel(x_ref, gamma_ref, beta_ref, o_ref):
    # Block covers the FULL batch axis, so the logical lane extent is the real
    # batch size and the reductions below are exact (Mosaic masks the internal
    # lane padding). Any OOB rows of a partial final feature tile produce
    # garbage that Pallas discards on writeback.
    xf = x_ref[...].astype(jnp.float32)
    inv_n = 1.0 / float(xf.shape[1])

    mean = jnp.sum(xf, axis=1, keepdims=True) * inv_n
    xc = xf - mean
    var = jnp.sum(xc * xc, axis=1, keepdims=True) * inv_n   # biased, BN training path
    inv_std = jax.lax.rsqrt(var + EPS)

    scale = inv_std * gamma_ref[...].astype(jnp.float32)    # (tile_c, 1)
    shift = beta_ref[...].astype(jnp.float32)                # (tile_c, 1)
    # TODO(synk): on v6e/v7x with bf16 inputs the affine could run in bf16.
    o_ref[...] = (xc * scale + shift).astype(o_ref.dtype)


def batch_second_batchnorm(x, gamma, beta):
    """x: (C, N) batch-second input. gamma, beta: (C,). Returns (C, N)."""
    C, N = x.shape
    itemsize = jnp.dtype(x.dtype).itemsize

    vmem_limit, tile_budget = _vmem_budgets()
    tile_c = _select_tile_c(C, N, itemsize, tile_budget)
    grid = pl.cdiv(C, tile_c)

    gamma2 = gamma.reshape(C, 1)
    beta2 = beta.reshape(C, 1)

    # TODO(synk): optionally add pipeline_mode=pl.Buffered(3) on the x spec
    # once profiling shows exposed DMA at step boundaries.
    return pl.pallas_call(
        _bn_kernel,
        out_shape=jax.ShapeDtypeStruct((C, N), x.dtype),
        grid_spec=pltpu.PrefetchScalarGridSpec(
            num_scalar_prefetch=0,
            grid=(grid,),
            in_specs=[
                pl.BlockSpec((tile_c, N), lambda i: (i, 0)),
                pl.BlockSpec((tile_c, 1), lambda i: (i, 0)),
                pl.BlockSpec((tile_c, 1), lambda i: (i, 0)),
            ],
            out_specs=pl.BlockSpec((tile_c, N), lambda i: (i, 0)),
        ),
        compiler_params=pltpu.CompilerParams(
            dimension_semantics=("parallel",),
            vmem_limit_bytes=vmem_limit,
        ),
    )(x, gamma2, beta2)


def _reference(x, gamma, beta):
    xf = x.astype(jnp.float32)
    mean = jnp.mean(xf, axis=1, keepdims=True)
    var = jnp.mean((xf - mean) ** 2, axis=1, keepdims=True)
    y = (xf - mean) / jnp.sqrt(var + EPS)
    return (y * gamma[:, None] + beta[:, None]).astype(x.dtype)


if __name__ == "__main__":
    key = jax.random.PRNGKey(0)

    # (C, N): primary small case, plus odd shapes that exercise a partial
    # final feature tile and a non-128-multiple batch axis.
    cases = [(16, 64), (20, 50), (40, 200)]

    for C, N in cases:
        key, kx, kg, kb = jax.random.split(key, 4)
        # Batch-second input: (input_size, batch)
        x = jax.random.normal(kx, (C, N), dtype=jnp.float32)
        # BatchNorm1d default init (weight=1, bias=0), perturbed so the affine
        # path is exercised.
        gamma = jnp.ones((C,), jnp.float32) + 0.1 * jax.random.normal(kg, (C,))
        beta = 0.1 * jax.random.normal(kb, (C,))

        out = jax.block_until_ready(batch_second_batchnorm(x, gamma, beta))
        ref = _reference(x, gamma, beta)

        assert out.shape == (C, N), (out.shape, (C, N))
        assert out.dtype == x.dtype
        assert jnp.allclose(out, ref, atol=1e-4, rtol=1e-4), f"mismatch at {(C, N)}"

    print("KERNEL_OK")
</pallas_src>

<mosaic_0001>
module attributes {stable_mosaic.version = 11 : i64} {
  func.func @_bn_kernel(%arg0: i32, %arg1: memref<8x64xf32, #tpu.memory_space<vmem>>, %arg2: memref<8x1xf32, #tpu.memory_space<vmem>>, %arg3: memref<8x1xf32, #tpu.memory_space<vmem>>, %arg4: memref<8x64xf32, #tpu.memory_space<vmem>>) attributes {dimension_semantics = [#tpu.dimension_semantics<parallel>], iteration_bounds = array<i64: 2>, scalar_prefetch = 0 : i64, scratch_operands = 0 : i64, tpu.core_type = #tpu.core_type<tc>, window_params = [{transform_indices = @transform_0, window_bounds = array<i64: 8, 64>}, {transform_indices = @transform_1, window_bounds = array<i64: 8, 1>}, {transform_indices = @transform_2, window_bounds = array<i64: 8, 1>}, {transform_indices = @transform_3, window_bounds = array<i64: 8, 64>}]} {
    %c0 = arith.constant 0 : index
    %c0_0 = arith.constant 0 : index
    %0 = vector.load %arg1[%c0, %c0_0] : memref<8x64xf32, #tpu.memory_space<vmem>>, vector<8x64xf32>
    %cst = arith.constant dense<0.000000e+00> : vector<8xf32>
    %1 = vector.multi_reduction <add>, %0, %cst [1] : vector<8x64xf32> to vector<8xf32>
    %2 = vector.shape_cast %1 : vector<8xf32> to vector<8x1xf32>
    %cst_1 = arith.constant 1.562500e-02 : f32
    %3 = vector.broadcast %cst_1 : f32 to vector<8x1xf32>
    %4 = arith.mulf %2, %3 : vector<8x1xf32>
    %5 = vector.broadcast %4 : vector<8x1xf32> to vector<8x64xf32>
    %6 = arith.subf %0, %5 : vector<8x64xf32>
    %7 = arith.mulf %6, %6 : vector<8x64xf32>
    %cst_2 = arith.constant dense<0.000000e+00> : vector<8xf32>
    %8 = vector.multi_reduction <add>, %7, %cst_2 [1] : vector<8x64xf32> to vector<8xf32>
    %9 = vector.shape_cast %8 : vector<8xf32> to vector<8x1xf32>
    %cst_3 = arith.constant 1.562500e-02 : f32
    %10 = vector.broadcast %cst_3 : f32 to vector<8x1xf32>
    %11 = arith.mulf %9, %10 : vector<8x1xf32>
    %cst_4 = arith.constant 9.99999974E-6 : f32
    %12 = vector.broadcast %cst_4 : f32 to vector<8x1xf32>
    %13 = arith.addf %11, %12 : vector<8x1xf32>
    %14 = math.rsqrt %13 : vector<8x1xf32>
    %c0_5 = arith.constant 0 : index
    %c0_6 = arith.constant 0 : index
    %15 = vector.load %arg2[%c0_5, %c0_6] : memref<8x1xf32, #tpu.memory_space<vmem>>, vector<8x1xf32>
    %16 = arith.mulf %14, %15 : vector<8x1xf32>
    %c0_7 = arith.constant 0 : index
    %c0_8 = arith.constant 0 : index
    %17 = vector.load %arg3[%c0_7, %c0_8] : memref<8x1xf32, #tpu.memory_space<vmem>>, vector<8x1xf32>
    %18 = vector.broadcast %16 : vector<8x1xf32> to vector<8x64xf32>
    %19 = arith.mulf %6, %18 : vector<8x64xf32>
    %20 = vector.broadcast %17 : vector<8x1xf32> to vector<8x64xf32>
    %21 = arith.addf %19, %20 : vector<8x64xf32>
    %c0_9 = arith.constant 0 : index
    %c0_10 = arith.constant 0 : index
    %22 = vector.load %arg4[%c0_9, %c0_10] : memref<8x64xf32, #tpu.memory_space<vmem>>, vector<8x64xf32>
    tpu.vector_store %arg4[%c0_9, %c0_10], %21 {strides = array<i32>} : memref<8x64xf32, #tpu.memory_space<vmem>>, vector<8x64xf32>,
    return
  }
  func.func @transform_0(%arg0: i32) -> (i32, i32) {
    %c0_i32 = arith.constant 0 : i32
    %c0_i32_0 = arith.constant 0 : i32
    return %arg0, %c0_i32 : i32, i32
  }
  func.func @transform_1(%arg0: i32) -> (i32, i32) {
    %c0_i32 = arith.constant 0 : i32
    %c0_i32_0 = arith.constant 0 : i32
    return %arg0, %c0_i32 : i32, i32
  }
  func.func @transform_2(%arg0: i32) -> (i32, i32) {
    %c0_i32 = arith.constant 0 : i32
    %c0_i32_0 = arith.constant 0 : i32
    return %arg0, %c0_i32 : i32, i32
  }
  func.func @transform_3(%arg0: i32) -> (i32, i32) {
    %c0_i32 = arith.constant 0 : i32
    %c0_i32_0 = arith.constant 0 : i32
    return %arg0, %c0_i32 : i32, i32
  }
}

</mosaic_0001>

<bundles_post_ra>
// kernel: tpu_custom_call.1
= control target key start
LH: loop header
LB: loop body
LE: loop exit
PB: predicated region body
PF: predicated region fallthrough
CT: control target
= control target key end

     0   :  { %8 = vsyncpa [#allocation3], 0  ;;  %s578_s0 = inlined_call_operand.vmem [shape: f32[16,64], index: 0, kind: input, shape index: {}]   ;;  %s579_s1 = inlined_call_operand.vmem [shape: f32[16,1], index: 1, kind: input, shape index: {}]   ;;  %s580_s2 = inlined_call_operand.vmem [shape: f32[16,1], index: 2, kind: input, shape index: {}]   ;;  %s581_s3 = inlined_call_operand.hbm [shape: f32[16,64], index: 3, kind: output, shape index: {}]  }
   0x1   :  { %10 = vsyncpa [#allocation3 + $0x1], 0  ;;  %s469_s12 = smov 0   ;;  %s471_s13 = smov 0  }
   0x2   :  { %s473_s14 = smov 0   ;;  %s475_s15 = smov 0  }
   0x3 LB: > { %s490_s16 = sadd.s32 4294967295, %s445_s15   ;;  %s327_s17 = sadd.s32 4294967294, %s445_s15   ;;  %s445_s15 = sphi %s475_s15, %s587_s15   ;;  %s441_s14 = sphi %s473_s14, %s586_s14   ;;  %s437_s13 = sphi %s471_s13, %s585_s13   ;;  %s433_s12 = sphi %s469_s12, %s584_s12  }
   0x4   : > { %s494_s18 = sadd.s32 1, %s445_s15   ;;  %s101_s19 = sadd.s32 1, %s441_s14 }
   0x5   : > { %s98_s20 = ssub.s32 %s445_s15, %s494_s18  ;;  %p111_p0 = scmp.ne.s32.totalorder %s441_s14, %s437_s13 }
   0x6   : > { %p99_p1 = scmp.eq.s32.totalorder %s98_s20, 0  ;;  %p112_p2 = scmp.eq.s32.totalorder %s490_s16, 1 }
   0x7   : > { %p117_p3 = scmp.ne.s32.totalorder %s437_s13, %s433_s12  ;;  %p118_p4 = scmp.eq.s32.totalorder %s327_s17, 1 }
   0x8   : > { %s505_s21 = scalar_select %p99_p1, %s441_s14, %s101_s19  }
   0x9   : > { %p507_p5 = por %p112_p2, %p111_p0  ;;  %p511_p6 = por %p118_p4, %p117_p3 }
   0xa   : > { %p330_p7 = scmp.ge.s32.totalorder %s445_s15, 1  ;;  %p157_p8 = scmp.lt.s32.totalorder %s445_s15, 3 }
   0xc   : > { %p158_p9 = pnand %p330_p7, %p157_p8 }
   0xd   : > { %p188_p10 = scmp.lt.s32.totalorder (!%p158_p9), %s490_s16, 1  ;;  %vm201_vm0 = vcmask (!%p158_p9), 523264   ;;  %v447_v7 = vmov (!%p158_p9), 0   ;;  %s185_s8 = sand.u32 (!%p158_p9), 1, %s437_s13  }
   0xe   : > { %161 = sbr.rel (%p158_p9) target bundleno = 483 (0x1e3), region = 32  ;;  %379 = vset.pattern.permute.xlu1 (!%p158_p9), %v447_v7  ;;  %380 = vset.pattern.permute.xlu0 (!%p158_p9), %v447_v7  ;;  %s331_s9 = sshll.u32 (!%p158_p9), %s185_s8, 3 }
   0xf   : > { %s336_s10 = sshll.u32 (!%p158_p9), %s490_s16, 7  ;;  %s187_s11 = scalar_lea.vmem (!%p158_p9), [#allocation2], %s331_s9 }
  0x10   : > { %s244_s17 = sshll.u32 (!%p158_p9), %s187_s11, 4  ;;  %s537_s17 = int_to_ptr.vmem [resolvable:$true] %s244_s17 }
  0x11   : > { %s383_s26 = scalar_lea.vmem (!%p158_p9), %s537_s17, 128 }
  0x12   : > { %p384_p11 = scmp.ne.s32.totalorder (!%p158_p9), %s537_s17, %s383_s26 }
  0x14   : > { %p385_p12 = pnand (!%p158_p9), %p384_p11, %p507_p5 }
  0x15   : > { %s189_s24 = scalar_select %p188_p10, %s490_s16, 1 }
  0x16   : > { %p386_p13 = pneg %p385_p12  ;;  %s448_s16 = smov [#allocation2]  }
  0x17   : > { %s332_s25 = sshll.u32 %s189_s24, 3  ;;  %s535_s24 = scalar_lea.hbm %s581_s3, %s336_s10 }
  0x18   : > { %s191_s28 = scalar_lea.vmem %s578_s0, %s332_s25  ;;  %s195_s4 = scalar_lea.vmem %s579_s1, %s332_s25 }
  0x19   : > { %v200_v0 = vld [vmem:[%s191_s28] sm:$0xff]  ;;  %s199_s7 = scalar_lea.vmem %s580_s2, %s332_s25  ;;  %s231_s25 = scalar_lea.sflag [#allocation3], %s185_s8 }
  0x1a   : > { %v202_v1 = vsel %vm201_vm0, %v200_v0, 0.0  ;;  %v214_v11 = vld [vmem:[%s195_s4] sm:$0xff]  ;;  %s387_s27 = sshll.u32 %s448_s16, 4  ;;  %s388_s27 = int_to_ptr.vmem [resolvable:$false] %s387_s27 }
  0x1b   : > { %203 = vadd.xlane.f32.xlu0 %v202_v1  ;;  %v216_v14 = vld [vmem:[%s199_s7] sm:$0xff]  ;;  %s389_s28 = scalar_lea.vmem %s388_s27, 256  ;;  %p390_p0 = scmp.lt.s32.totalorder %s537_s17, %s388_s27 }
  0x1c   : > { %p391_p1 = scmp.lt.s32.totalorder %s389_s28, %s383_s26 }
  0x1e   : > { %p392_p2 = por %p391_p1, %p390_p0 }
  0x20   : > { %p393_p3 = pnand %p392_p2, %p386_p13 }
  0xa8   : > { %v204_v2 = vpop.xlane.xlu0 %203 }
  0xa9   : > { %v205_v3 = vmul.f32 0.015625, %v204_v2 }
  0xab   : > { %v206_v4 = vsub.f32 %v200_v0, %v205_v3 }
  0xad   : > { %v207_v5 = vmul.f32 %v206_v4, %v206_v4 }
  0xaf   : > { %v208_v6 = vsel %vm201_vm0, %v207_v5, 0.0 }
  0xb0   : > { %209 = vadd.xlane.f32.xlu0 %v208_v6 }
 0x13d   : > { %v210_v8 = vpop.xlane.xlu0 %209 }
 0x13e   : > { %v211_v9 = vmul.f32 0.015625, %v210_v8 }
 0x140   : > { %v212_v10 = vadd.f32 1e-05, %v211_v9 }
 0x142   : > { %381 = vrsqrt.f32 %v212_v10 }
 0x14c   : > { %v382_v12 = vpop.eup %381 }
 0x14d   : > { %v215_v13 = vmul.f32 %v382_v12, %v214_v11 }
 0x14f   : > { %219 = vperm.xlu1 %379, %v215_v13  }
 0x153   : > { %225 = vperm.xlu1 %379, %v216_v14  }
 0x1ce   : > { %v220_v15 = vpop.permute.xlu1 %219 }
 0x1cf   : > { %v222_v16 = vmul.f32 %v220_v15, %v206_v4 }
 0x1d2   : > { %v226_v17 = vpop.permute.xlu1 %225 }
 0x1d3   : > { %v228_v18 = vadd.f32 %v226_v17, %v222_v16 }
 0x1d5   : > { %229 = vst.msk [vmem:[%s187_s11] sm:$0xff] %vm201_vm0, %v228_v18 }
 0x1d6   : > { %396 = shalt.err (!%p393_p3)
}
 0x1d7   : > { %s397_s29 = scalar_lea.hbm %s535_s24, 128  ;;  %s401_s5 = scalar_lea.hbm %s581_s3, 256 }
 0x1d8   : > { %p398_p4 = scmp.ne.s32.totalorder %s535_s24, %s397_s29  ;;  %p402_p9 = scmp.lt.u32.totalorder %s535_s24, %s581_s3 }
 0x1d9   : > { %p403_p10 = scmp.lt.u32.totalorder %s401_s5, %s397_s29  ;;  %p405_p12 = scmp.lt.u32.totalorder %s397_s29, %s535_s24 }
 0x1da   : > { %p399_p7 = pnand %p398_p4, %p507_p5 }
 0x1db   : > { %p404_p11 = por %p403_p10, %p402_p9 }
 0x1dc   : > { %p400_p8 = pneg %p399_p7 }
 0x1dd   : > { %p406_p13 = por %p405_p12, %p404_p11 }
 0x1df   : > { %p407_p0 = pnand %p406_p13, %p400_p8 }
 0x1e1   : > { %410 = shalt.err (!%p407_p0)
}
 0x1e2   : > { %339 = dma.vmem_to_hbm [thread:$0]  (%p507_p5), %s537_s17, 128, %s535_s24, %s231_s25  }
 0x1e3 PF: > { %p345_p1 = scmp.ge.s32.totalorder %s445_s15, 2  ;;  %s256_s8 = sand.u32 1, %s433_s12  }
 0x1e4   : > { %s257_s9 = scalar_lea.sflag [#allocation3], %s256_s8 }
 0x1e5   : > { %p342_p2 = pnand %p345_p1, %p511_p6 }
 0x1e7   : > { %428 = dma.done.wait (!%p342_p2), %s257_s9, 128  }
 0x1e8   : > { %430 = vsyncadd (!%p342_p2), %s257_s9, 4294967168  ;;  %p13_p3 = scmp.ge.s32.totalorder %s494_s18, 4   ;;  %s584_s12 = smov %s437_s13 }
 0x1e9   : > { %s585_s13 = smov %s441_s14  ;;  %s586_s14 = smov %s505_s21 }
 0x1ea   : > { %s587_s15 = smov %s494_s18  ;;  %15 = sbr.rel (!%p13_p3) target bundleno = 3 (0x3), region = 73 }
 0x1f1   :  { %262 = vsyncpa [#allocation3], 1 }
 0x1f2   :  { %264 = vsyncpa [#allocation3 + $0x1], 1 }

</bundles_post_ra>
